<compile_context>
chip_gen: v6e
topology: v6e:2x2x1
jax: 0.10.0
libtpu: 0.0.40
codegen_flags: <defaults>
</compile_context>

<pallas_src>
from functools import partial
from typing import Dict, Optional, Union

import jax
import jax.numpy as jnp
from jax.experimental import pallas as pl
from jax.experimental.pallas import tpu as pltpu


_PACK = 8 * 128                 # atoms per fully packed (8,128) vreg per component
_MAX_FUSED_ATOMS = 131072       # single fused VMEM-resident block
_MAX_TILE_ATOMS = 131072        # per-tile atoms for the two-pass huge-N pipeline
_VMEM_LIMIT = 32 * 1024 * 1024  # safe on v5e/v6e (128 MiB) and v7x (64 MiB physical)


# ---------------------------------------------------------------------------
# Small shared math helpers (usable both in-kernel and in JAX glue)
# ---------------------------------------------------------------------------
def _sum11(a):
    """(8, L) slab -> (1, 1) total, via two axis reductions (lane then sublane)."""
    return jnp.sum(jnp.sum(a, axis=1, keepdims=True), axis=0, keepdims=True)


def _omega_bias_from_moments(mass, P, Q, L0, S, linear):
    """Raw moments (about the origin) -> (w0,w1,w2, b0,b1,b2).

    mass: total mass; P = sum m*v; Q = sum m*x; L0 = sum x x (m*v);
    S = (Sxx,Syy,Szz,Sxy,Sxz,Syz) = sum m * x_a * x_b.
    Closed-form symmetric 3x3 inverse (adjugate/det) == torch.inverse @ L.
    Works on scalars (glue) or (1,1) tiles (in-kernel)."""
    inv_m = 1.0 / mass
    cx, cy, cz = Q[0] * inv_m, Q[1] * inv_m, Q[2] * inv_m
    # angular momentum about the COM (parallel-axis shift)
    lx = L0[0] - (cy * P[2] - cz * P[1])
    ly = L0[1] - (cz * P[0] - cx * P[2])
    lz = L0[2] - (cx * P[1] - cy * P[0])
    # second moments about the COM
    sxx = S[0] - mass * cx * cx
    syy = S[1] - mass * cy * cy
    szz = S[2] - mass * cz * cz
    sxy = S[3] - mass * cx * cy
    sxz = S[4] - mass * cx * cz
    syz = S[5] - mass * cy * cz
    # inertia tensor I = tr(S) * eye(3) - S  (symmetric)
    a, b, c = syy + szz, sxx + szz, sxx + syy
    d, e, f = -sxy, -sxz, -syz
    det = a * (b * c - f * f) - d * (d * c - f * e) + e * (d * f - b * e)
    inv_det = 1.0 / det
    # TODO(synk): singular inertia (<3 atoms / collinear) yields inf/nan,
    # same behavior as torch.inverse in the reference module.
    a00 = b * c - f * f
    a01 = e * f - d * c
    a02 = d * f - e * b
    a11 = a * c - e * e
    a12 = e * d - a * f
    a22 = a * b - d * d
    w0 = (a00 * lx + a01 * ly + a02 * lz) * inv_det
    w1 = (a01 * lx + a11 * ly + a12 * lz) * inv_det
    w2 = (a02 * lx + a12 * ly + a22 * lz) * inv_det
    if linear:
        u0, u1, u2 = P[0] * inv_m, P[1] * inv_m, P[2] * inv_m
    else:
        u0 = u1 = u2 = 0.0
    b0 = u0 - (w1 * cz - w2 * cy)
    b1 = u1 - (w2 * cx - w0 * cz)
    b2 = u2 - (w0 * cy - w1 * cx)
    return w0, w1, w2, b0, b1, b2


# ---------------------------------------------------------------------------
# Fused single-block kernels (the hot path): one HBM round trip, no glue
# ---------------------------------------------------------------------------
def _fused_linear_kernel(v_ref, m_ref, o_ref):
    """v:(3,8,L) m:(8,L).  v_out = v - (sum m v)/M."""
    v0 = v_ref[0].astype(jnp.float32)
    v1 = v_ref[1].astype(jnp.float32)
    v2 = v_ref[2].astype(jnp.float32)
    m = m_ref[...].astype(jnp.float32)
    inv_m = 1.0 / _sum11(m)
    b0 = _sum11(m * v0) * inv_m
    b1 = _sum11(m * v1) * inv_m
    b2 = _sum11(m * v2) * inv_m
    o_ref[0] = (v0 - b0).astype(o_ref.dtype)
    o_ref[1] = (v1 - b1).astype(o_ref.dtype)
    o_ref[2] = (v2 - b2).astype(o_ref.dtype)


def _fused_full_kernel(x_ref, v_ref, m_ref, o_ref, *, linear):
    """Fused (linear+)angular removal.  Reads x/v/m once, computes all 16
    moments, inverts the 3x3 inertia in closed form, applies, writes once."""
    x0 = x_ref[0].astype(jnp.float32)
    x1 = x_ref[1].astype(jnp.float32)
    x2 = x_ref[2].astype(jnp.float32)
    v0 = v_ref[0].astype(jnp.float32)
    v1 = v_ref[1].astype(jnp.float32)
    v2 = v_ref[2].astype(jnp.float32)
    m = m_ref[...].astype(jnp.float32)
    p0, p1, p2 = m * v0, m * v1, m * v2          # momenta
    q0, q1, q2 = m * x0, m * x1, m * x2          # mass-weighted positions

    mass = _sum11(m)
    P = (_sum11(p0), _sum11(p1), _sum11(p2))
    Q = (_sum11(q0), _sum11(q1), _sum11(q2))
    L0 = (_sum11(x1 * p2 - x2 * p1),
          _sum11(x2 * p0 - x0 * p2),
          _sum11(x0 * p1 - x1 * p0))
    S = (_sum11(q0 * x0), _sum11(q1 * x1), _sum11(q2 * x2),
         _sum11(q0 * x1), _sum11(q0 * x2), _sum11(q1 * x2))

    w0, w1, w2, b0, b1, b2 = _omega_bias_from_moments(mass, P, Q, L0, S, linear)

    o_ref[0] = (v0 - b0 - (w1 * x2 - w2 * x1)).astype(o_ref.dtype)
    o_ref[1] = (v1 - b1 - (w2 * x0 - w0 * x2)).astype(o_ref.dtype)
    o_ref[2] = (v2 - b2 - (w0 * x1 - w1 * x0)).astype(o_ref.dtype)


# ---------------------------------------------------------------------------
# Two-pass pipeline for huge N — pass 1: tiled moment reduction
# ---------------------------------------------------------------------------
def _reduce_linear_kernel(v_ref, m_ref, o_ref, acc_ref):
    """acc rows: 0 = m ; 1..3 = m*v.  Per-step work is full-slab VPU adds;
    the cross-lane reduction happens exactly once in finalize."""
    @pl.when(pl.program_id(0) == 0)
    def _init():
        acc_ref[...] = jnp.zeros_like(acc_ref)

    m = m_ref[...].astype(jnp.float32)
    acc_ref[0] += m
    acc_ref[1] += m * v_ref[0].astype(jnp.float32)
    acc_ref[2] += m * v_ref[1].astype(jnp.float32)
    acc_ref[3] += m * v_ref[2].astype(jnp.float32)

    @pl.when(pl.program_id(0) == pl.num_programs(0) - 1)
    def _fin():
        for r in range(4):
            o_ref[r:r + 1, :] = _sum11(acc_ref[r])


def _reduce_full_kernel(x_ref, v_ref, m_ref, o_ref, acc_ref):
    """acc rows:
       0: M   1..3: sum m*x   4..6: sum m*v   7..9: sum x x (m*v) (origin)
       10..12: sum m*x^2, m*y^2, m*z^2        13..15: sum m*xy, m*xz, m*yz
    COM shifts (parallel-axis theorem) are applied in _omega_bias_from_moments."""
    @pl.when(pl.program_id(0) == 0)
    def _init():
        acc_ref[...] = jnp.zeros_like(acc_ref)

    m = m_ref[...].astype(jnp.float32)
    x0 = x_ref[0].astype(jnp.float32)
    x1 = x_ref[1].astype(jnp.float32)
    x2 = x_ref[2].astype(jnp.float32)
    v0 = v_ref[0].astype(jnp.float32)
    v1 = v_ref[1].astype(jnp.float32)
    v2 = v_ref[2].astype(jnp.float32)
    p0, p1, p2 = m * v0, m * v1, m * v2
    q0, q1, q2 = m * x0, m * x1, m * x2

    acc_ref[0] += m
    acc_ref[1] += q0
    acc_ref[2] += q1
    acc_ref[3] += q2
    acc_ref[4] += p0
    acc_ref[5] += p1
    acc_ref[6] += p2
    acc_ref[7] += x1 * p2 - x2 * p1
    acc_ref[8] += x2 * p0 - x0 * p2
    acc_ref[9] += x0 * p1 - x1 * p0
    acc_ref[10] += q0 * x0
    acc_ref[11] += q1 * x1
    acc_ref[12] += q2 * x2
    acc_ref[13] += q0 * x1
    acc_ref[14] += q0 * x2
    acc_ref[15] += q1 * x2

    @pl.when(pl.program_id(0) == pl.num_programs(0) - 1)
    def _fin():
        for r in range(16):
            o_ref[r:r + 1, :] = _sum11(acc_ref[r])


# ---------------------------------------------------------------------------
# Two-pass pipeline — pass 2: tiled in-place apply
# ---------------------------------------------------------------------------
def _apply_linear_kernel(par_ref, v_ref, o_ref):
    """par (SMEM, 3): com velocity.  v:(3,8,L)."""
    b0, b1, b2 = par_ref[0], par_ref[1], par_ref[2]
    o_ref[0] = (v_ref[0].astype(jnp.float32) - b0).astype(o_ref.dtype)
    o_ref[1] = (v_ref[1].astype(jnp.float32) - b1).astype(o_ref.dtype)
    o_ref[2] = (v_ref[2].astype(jnp.float32) - b2).astype(o_ref.dtype)


def _apply_full_kernel(par_ref, x_ref, v_ref, o_ref):
    """par (SMEM, 6): [w0,w1,w2,b0,b1,b2];  v_out = v - b - w x x."""
    w0, w1, w2 = par_ref[0], par_ref[1], par_ref[2]
    b0, b1, b2 = par_ref[3], par_ref[4], par_ref[5]
    x0 = x_ref[0].astype(jnp.float32)
    x1 = x_ref[1].astype(jnp.float32)
    x2 = x_ref[2].astype(jnp.float32)
    v0 = v_ref[0].astype(jnp.float32)
    v1 = v_ref[1].astype(jnp.float32)
    v2 = v_ref[2].astype(jnp.float32)
    o_ref[0] = (v0 - b0 - (w1 * x2 - w2 * x1)).astype(o_ref.dtype)
    o_ref[1] = (v1 - b1 - (w2 * x0 - w0 * x2)).astype(o_ref.dtype)
    o_ref[2] = (v2 - b2 - (w0 * x1 - w1 * x0)).astype(o_ref.dtype)


# ---------------------------------------------------------------------------
# pallas_call plumbing
# ---------------------------------------------------------------------------
def _fused_call(operands, kernel, n_lanes, out_dtype, v_idx):
    vmem = pl.BlockSpec(memory_space=pltpu.MemorySpace.VMEM)
    return pl.pallas_call(
        kernel,
        out_shape=jax.ShapeDtypeStruct((3, 8, n_lanes), out_dtype),
        in_specs=[vmem for _ in operands],
        out_specs=vmem,
        input_output_aliases={v_idx: 0},            # write corrected v in place
        compiler_params=pltpu.CompilerParams(vmem_limit_bytes=_VMEM_LIMIT),
    )(*operands)


def _reduce_moments(pos_p, vel_p, m_p, tile_lanes, angular):
    n_lanes = vel_p.shape[2]
    grid = (n_lanes // tile_lanes,)
    vec_spec = pl.BlockSpec((3, 8, tile_lanes), lambda i: (0, 0, i))
    m_spec = pl.BlockSpec((8, tile_lanes), lambda i: (0, i))
    if angular:
        rows, kernel = 16, _reduce_full_kernel
        operands, in_specs = (pos_p, vel_p, m_p), [vec_spec, vec_spec, m_spec]
    else:
        rows, kernel = 4, _reduce_linear_kernel
        operands, in_specs = (vel_p, m_p), [vec_spec, m_spec]
    out = pl.pallas_call(
        kernel,
        out_shape=jax.ShapeDtypeStruct((rows, 1), jnp.float32),
        grid=grid,
        in_specs=in_specs,
        out_specs=pl.BlockSpec((rows, 1), lambda i: (0, 0)),
        scratch_shapes=[pltpu.VMEM((rows, 8, tile_lanes), jnp.float32)],
        compiler_params=pltpu.CompilerParams(
            dimension_semantics=("arbitrary",),     # sequential accumulator
            vmem_limit_bytes=_VMEM_LIMIT),
    )(*operands)
    # TODO(synk): on v7x (2 TensorCores) split this grid into (2, tiles/2) with
    # per-core partial outputs; a single "arbitrary" axis uses one core only.
    return out[:, 0]


def _apply_correction(params, pos_p, vel_p, tile_lanes, angular, out_dtype):
    n_lanes = vel_p.shape[2]
    grid = (n_lanes // tile_lanes,)
    vec_spec = pl.BlockSpec((3, 8, tile_lanes), lambda i: (0, 0, i))
    smem_spec = pl.BlockSpec(memory_space=pltpu.MemorySpace.SMEM)
    if angular:
        kernel = _apply_full_kernel
        operands, in_specs, v_idx = (params, pos_p, vel_p), \
            [smem_spec, vec_spec, vec_spec], 2
    else:
        kernel = _apply_linear_kernel
        operands, in_specs, v_idx = (params, vel_p), [smem_spec, vec_spec], 1
    return pl.pallas_call(
        kernel,
        out_shape=jax.ShapeDtypeStruct((3, 8, n_lanes), out_dtype),
        grid=grid,
        in_specs=in_specs,
        out_specs=vec_spec,
        input_output_aliases={v_idx: 0},            # in-place velocity update
        compiler_params=pltpu.CompilerParams(
            dimension_semantics=("parallel",),
            vmem_limit_bytes=_VMEM_LIMIT),
    )(*operands)


# ---------------------------------------------------------------------------
# Tiling / packing helpers
# ---------------------------------------------------------------------------
def _choose_tiling(n):
    """Return (tile_atoms, padded_atoms, use_fused_single_block)."""
    npad = -(-n // _PACK) * _PACK
    if npad <= _MAX_FUSED_ATOMS:
        return npad, npad, True
    ntiles = -(-npad // _MAX_TILE_ATOMS)
    tile = -(-npad // (ntiles * _PACK)) * _PACK     # pad bounded to < 1024*ntiles
    return tile, ntiles * tile, False


def _pack3(a, n, npad):
    """(3, n) -> (3, 8, npad//8) (row-major view + zero pad)."""
    if npad != n:
        a = jnp.pad(a, ((0, 0), (0, npad - n)))
    return a.reshape(3, 8, npad // 8)


def _pack1(m, n, npad):
    """(n,)/(n,1)/(1,n) -> (8, npad//8)."""
    m = jnp.reshape(m, (n,))
    if npad != n:
        m = jnp.pad(m, (0, npad - n))
    return m.reshape(8, npad // 8)


# ---------------------------------------------------------------------------
# Functional entry point (lane-dense (3, N) layout — the hot path)
# ---------------------------------------------------------------------------
@partial(jax.jit, static_argnames=("linear", "angular", "tile_atoms"))
def zero_momentum_lane_dense(velocities, masses, positions=None, *,
                             linear: bool = True, angular: bool = False,
                             tile_atoms: Optional[int] = None):
    """velocities/positions: (3, N); masses: (N,), (1,N) or (N,1).
    Returns (3, N) in velocities.dtype.  Keep simulation state in this layout
    across MD steps so no relayout is paid around the kernels."""
    if not (linear or angular):
        raise ValueError("Nothing to adjust: enable linear and/or angular.")
    if angular and positions is None:
        raise ValueError("positions are required to zero angular momentum")
    out_dtype = velocities.dtype
    n = velocities.shape[1]

    if tile_atoms is None:
        tile, npad, fused = _choose_tiling(n)
    else:
        if tile_atoms % _PACK:
            raise ValueError("tile_atoms must be a multiple of 1024")
        tile = tile_atoms
        npad = -(-n // tile) * tile
        fused = False                               # force the two-pass path

    v_p = _pack3(velocities, n, npad)
    m_p = _pack1(masses, n, npad)
    x_p = _pack3(positions, n, npad) if angular else None
    n_lanes, tile_lanes = npad // 8, tile // 8

    if fused:
        if angular:
            out_p = _fused_call((x_p, v_p, m_p),
                                partial(_fused_full_kernel, linear=linear),
                                n_lanes, out_dtype, v_idx=1)
        else:
            out_p = _fused_call((v_p, m_p), _fused_linear_kernel,
                                n_lanes, out_dtype, v_idx=0)
    else:
        if angular:
            mom = _reduce_moments(x_p, v_p, m_p, tile_lanes, angular=True)
            params = jnp.stack(_omega_bias_from_moments(
                mom[0],
                (mom[4], mom[5], mom[6]),           # P = sum m v
                (mom[1], mom[2], mom[3]),           # Q = sum m x
                (mom[7], mom[8], mom[9]),           # L0 about the origin
                (mom[10], mom[11], mom[12], mom[13], mom[14], mom[15]),
                linear)).astype(jnp.float32)        # (6,) -> SMEM
        else:
            mom = _reduce_moments(None, v_p, m_p, tile_lanes, angular=False)
            params = (mom[1:4] / mom[0]).astype(jnp.float32)   # (3,) com_v
        out_p = _apply_correction(params, x_p, v_p, tile_lanes, angular, out_dtype)

    out = out_p.reshape(3, npad)
    return out[:, :n] if npad != n else out


# ---------------------------------------------------------------------------
# Module-equivalent wrapper (PyTorch (N, 3) convention)
# ---------------------------------------------------------------------------
class ZeroMomentum:
    """JAX/Pallas port of trajcast ZeroMomentum.  `graph` is a dict with keys
    'pos' (N,3), 'velocities' (N,3), 'atomic_masses' (N,) [, 'total_mass' ()].
    The (N,3)<->(3,N) transposes here are a full HBM relayout; for the hot path
    keep state lane-dense and call zero_momentum_lane_dense directly."""

    def __init__(self, settings: Union[bool, Dict]):
        if isinstance(settings, bool):
            if not settings:
                raise ValueError(
                    "Momentum is not zeroed by default. Please do not set this "
                    "argument if you do want to adjust the velocities."
                )
            self.adjust_freq = 1
            self.zero_linear = True
            self.zero_angular = False
        else:
            self.adjust_freq = settings.get("every", 1)
            self.zero_linear = settings.get("linear", True)
            self.zero_angular = settings.get("angular", False)
        if not (self.zero_linear or self.zero_angular):
            raise ValueError(
                "Why adding the keyword momentum if you do not want to change "
                "anything? Adjust please!"
            )

    def __call__(self, graph: Dict) -> Dict:
        graph = dict(graph)
        vel = jnp.asarray(graph["velocities"])
        masses = jnp.asarray(graph["atomic_masses"])
        pos = jnp.asarray(graph["pos"]) if self.zero_angular else None
        # Total mass is re-derived in-kernel from the resident masses — by
        # definition equal to graph['total_mass'] — so semantics are unchanged.
        out_t = zero_momentum_lane_dense(
            vel.T, masses, None if pos is None else pos.T,
            linear=self.zero_linear, angular=self.zero_angular)
        graph["velocities"] = out_t.T
        return graph


# ---------------------------------------------------------------------------
# Pure-JAX references (correctness checks)
# ---------------------------------------------------------------------------
def _ref_linear(vel, masses):
    return vel - (masses[:, None] * vel).sum(0) / masses.sum()


def _ref_angular(pos, vel, masses):
    m_total = masses.sum()
    com = (masses[:, None] * pos).sum(0) / m_total
    r = pos - com
    p = masses[:, None] * vel
    ang_l = jnp.cross(r, p).sum(0)
    inertia = (jnp.sum(masses * (r * r).sum(1)) * jnp.eye(3)
               - (masses[:, None] * r).T @ r)
    omega = jnp.linalg.solve(inertia, ang_l)
    return vel - jnp.cross(omega[None, :], r)


if __name__ == "__main__":
    key = jax.random.PRNGKey(0)
    k1, k2, k3 = jax.random.split(key, 3)

    n_atoms = 512
    pos = jax.random.normal(k1, (n_atoms, 3), jnp.float32) * 3.0
    vel = jax.random.normal(k2, (n_atoms, 3), jnp.float32)
    masses = jax.random.uniform(k3, (n_atoms,), jnp.float32,
                                minval=1.0, maxval=16.0)
    graph = {"pos": pos, "velocities": vel, "atomic_masses": masses,
             "total_mass": masses.sum()}

    # 1) fused single-block linear + angular removal (the hot path)
    module = ZeroMomentum({"every": 1, "linear": True, "angular": True})
    v_all = jax.block_until_ready(module(graph)["velocities"])
    v_ref = _ref_angular(pos, _ref_linear(vel, masses), masses)
    assert v_all.shape == vel.shape and v_all.dtype == vel.dtype
    assert jnp.allclose(v_all, v_ref, atol=1e-3, rtol=1e-3), "linear+angular mismatch"

    # 2) linear-only (default settings=True) on a ragged N (exercises padding)
    n2 = 77
    g2 = {"pos": pos[:n2], "velocities": vel[:n2],
          "atomic_masses": masses[:n2], "total_mass": masses[:n2].sum()}
    v_lin = jax.block_until_ready(ZeroMomentum(True)(g2)["velocities"])
    assert jnp.allclose(v_lin, _ref_linear(vel[:n2], masses[:n2]),
                        atol=1e-4, rtol=1e-4), "linear mismatch"

    # 3) angular-only on a ragged N
    v_ang = jax.block_until_ready(
        ZeroMomentum({"linear": False, "angular": True})(g2)["velocities"])
    assert jnp.allclose(v_ang, _ref_angular(pos[:n2], vel[:n2], masses[:n2]),
                        atol=1e-3, rtol=1e-3), "angular mismatch"

    # 4) two-pass pipelined path (forced small tiles) via the lane-dense API
    n3 = 2048
    kp, kv, km = jax.random.split(jax.random.PRNGKey(1), 3)
    pos3 = jax.random.normal(kp, (3, n3), jnp.float32) * 2.0
    vel3 = jax.random.normal(kv, (3, n3), jnp.float32)
    m3 = jax.random.uniform(km, (n3,), jnp.float32, minval=1.0, maxval=4.0)
    v_two = jax.block_until_ready(zero_momentum_lane_dense(
        vel3, m3, pos3, linear=True, angular=True, tile_atoms=1024))
    v_two_ref = _ref_angular(pos3.T, _ref_linear(vel3.T, m3), m3).T
    assert jnp.allclose(v_two, v_two_ref, atol=1e-3, rtol=1e-3), "two-pass mismatch"

    # 5) two-pass linear-only
    v_two_lin = jax.block_until_ready(zero_momentum_lane_dense(
        vel3, m3, linear=True, angular=False, tile_atoms=1024))
    assert jnp.allclose(v_two_lin, _ref_linear(vel3.T, m3).T,
                        atol=1e-4, rtol=1e-4), "two-pass linear mismatch"

    print("KERNEL_OK")
</pallas_src>

<mosaic_0001>
module attributes {stable_mosaic.version = 11 : i64} {
  func.func @_fused_full_kernel(%arg0: memref<3x8x128xf32, #tpu.memory_space<vmem>>, %arg1: memref<3x8x128xf32, #tpu.memory_space<vmem>>, %arg2: memref<8x128xf32, #tpu.memory_space<vmem>>, %arg3: memref<3x8x128xf32, #tpu.memory_space<vmem>>) attributes {dimension_semantics = [], scalar_prefetch = 0 : i64, scratch_operands = 0 : i64, tpu.core_type = #tpu.core_type<tc>} {
    %c0 = arith.constant 0 : index
    %c0_0 = arith.constant 0 : index
    %c0_1 = arith.constant 0 : index
    %0 = vector.load %arg0[%c0, %c0_0, %c0_1] : memref<3x8x128xf32, #tpu.memory_space<vmem>>, vector<1x8x128xf32>
    %1 = vector.shape_cast %0 : vector<1x8x128xf32> to vector<8x128xf32>
    %c1 = arith.constant 1 : index
    %c0_2 = arith.constant 0 : index
    %c0_3 = arith.constant 0 : index
    %2 = vector.load %arg0[%c1, %c0_2, %c0_3] : memref<3x8x128xf32, #tpu.memory_space<vmem>>, vector<1x8x128xf32>
    %3 = vector.shape_cast %2 : vector<1x8x128xf32> to vector<8x128xf32>
    %c2 = arith.constant 2 : index
    %c0_4 = arith.constant 0 : index
    %c0_5 = arith.constant 0 : index
    %4 = vector.load %arg0[%c2, %c0_4, %c0_5] : memref<3x8x128xf32, #tpu.memory_space<vmem>>, vector<1x8x128xf32>
    %5 = vector.shape_cast %4 : vector<1x8x128xf32> to vector<8x128xf32>
    %c0_6 = arith.constant 0 : index
    %c0_7 = arith.constant 0 : index
    %c0_8 = arith.constant 0 : index
    %6 = vector.load %arg1[%c0_6, %c0_7, %c0_8] : memref<3x8x128xf32, #tpu.memory_space<vmem>>, vector<1x8x128xf32>
    %7 = vector.shape_cast %6 : vector<1x8x128xf32> to vector<8x128xf32>
    %c1_9 = arith.constant 1 : index
    %c0_10 = arith.constant 0 : index
    %c0_11 = arith.constant 0 : index
    %8 = vector.load %arg1[%c1_9, %c0_10, %c0_11] : memref<3x8x128xf32, #tpu.memory_space<vmem>>, vector<1x8x128xf32>
    %9 = vector.shape_cast %8 : vector<1x8x128xf32> to vector<8x128xf32>
    %c2_12 = arith.constant 2 : index
    %c0_13 = arith.constant 0 : index
    %c0_14 = arith.constant 0 : index
    %10 = vector.load %arg1[%c2_12, %c0_13, %c0_14] : memref<3x8x128xf32, #tpu.memory_space<vmem>>, vector<1x8x128xf32>
    %11 = vector.shape_cast %10 : vector<1x8x128xf32> to vector<8x128xf32>
    %c0_15 = arith.constant 0 : index
    %c0_16 = arith.constant 0 : index
    %12 = vector.load %arg2[%c0_15, %c0_16] : memref<8x128xf32, #tpu.memory_space<vmem>>, vector<8x128xf32>
    %13 = arith.mulf %12, %7 : vector<8x128xf32>
    %14 = arith.mulf %12, %9 : vector<8x128xf32>
    %15 = arith.mulf %12, %11 : vector<8x128xf32>
    %16 = arith.mulf %12, %1 : vector<8x128xf32>
    %17 = arith.mulf %12, %3 : vector<8x128xf32>
    %18 = arith.mulf %12, %5 : vector<8x128xf32>
    %cst = arith.constant dense<0.000000e+00> : vector<8xf32>
    %19 = vector.multi_reduction <add>, %12, %cst [1] : vector<8x128xf32> to vector<8xf32>
    %20 = vector.shape_cast %19 : vector<8xf32> to vector<8x1xf32>
    %cst_17 = arith.constant dense<0.000000e+00> : vector<1xf32>
    %21 = vector.multi_reduction <add>, %20, %cst_17 [0] : vector<8x1xf32> to vector<1xf32>
    %22 = vector.shape_cast %21 : vector<1xf32> to vector<1x1xf32>
    %cst_18 = arith.constant dense<0.000000e+00> : vector<8xf32>
    %23 = vector.multi_reduction <add>, %13, %cst_18 [1] : vector<8x128xf32> to vector<8xf32>
    %24 = vector.shape_cast %23 : vector<8xf32> to vector<8x1xf32>
    %cst_19 = arith.constant dense<0.000000e+00> : vector<1xf32>
    %25 = vector.multi_reduction <add>, %24, %cst_19 [0] : vector<8x1xf32> to vector<1xf32>
    %26 = vector.shape_cast %25 : vector<1xf32> to vector<1x1xf32>
    %cst_20 = arith.constant dense<0.000000e+00> : vector<8xf32>
    %27 = vector.multi_reduction <add>, %14, %cst_20 [1] : vector<8x128xf32> to vector<8xf32>
    %28 = vector.shape_cast %27 : vector<8xf32> to vector<8x1xf32>
    %cst_21 = arith.constant dense<0.000000e+00> : vector<1xf32>
    %29 = vector.multi_reduction <add>, %28, %cst_21 [0] : vector<8x1xf32> to vector<1xf32>
    %30 = vector.shape_cast %29 : vector<1xf32> to vector<1x1xf32>
    %cst_22 = arith.constant dense<0.000000e+00> : vector<8xf32>
    %31 = vector.multi_reduction <add>, %15, %cst_22 [1] : vector<8x128xf32> to vector<8xf32>
    %32 = vector.shape_cast %31 : vector<8xf32> to vector<8x1xf32>
    %cst_23 = arith.constant dense<0.000000e+00> : vector<1xf32>
    %33 = vector.multi_reduction <add>, %32, %cst_23 [0] : vector<8x1xf32> to vector<1xf32>
    %34 = vector.shape_cast %33 : vector<1xf32> to vector<1x1xf32>
    %cst_24 = arith.constant dense<0.000000e+00> : vector<8xf32>
    %35 = vector.multi_reduction <add>, %16, %cst_24 [1] : vector<8x128xf32> to vector<8xf32>
    %36 = vector.shape_cast %35 : vector<8xf32> to vector<8x1xf32>
    %cst_25 = arith.constant dense<0.000000e+00> : vector<1xf32>
    %37 = vector.multi_reduction <add>, %36, %cst_25 [0] : vector<8x1xf32> to vector<1xf32>
    %38 = vector.shape_cast %37 : vector<1xf32> to vector<1x1xf32>
    %cst_26 = arith.constant dense<0.000000e+00> : vector<8xf32>
    %39 = vector.multi_reduction <add>, %17, %cst_26 [1] : vector<8x128xf32> to vector<8xf32>
    %40 = vector.shape_cast %39 : vector<8xf32> to vector<8x1xf32>
    %cst_27 = arith.constant dense<0.000000e+00> : vector<1xf32>
    %41 = vector.multi_reduction <add>, %40, %cst_27 [0] : vector<8x1xf32> to vector<1xf32>
    %42 = vector.shape_cast %41 : vector<1xf32> to vector<1x1xf32>
    %cst_28 = arith.constant dense<0.000000e+00> : vector<8xf32>
    %43 = vector.multi_reduction <add>, %18, %cst_28 [1] : vector<8x128xf32> to vector<8xf32>
    %44 = vector.shape_cast %43 : vector<8xf32> to vector<8x1xf32>
    %cst_29 = arith.constant dense<0.000000e+00> : vector<1xf32>
    %45 = vector.multi_reduction <add>, %44, %cst_29 [0] : vector<8x1xf32> to vector<1xf32>
    %46 = vector.shape_cast %45 : vector<1xf32> to vector<1x1xf32>
    %47 = arith.mulf %3, %15 : vector<8x128xf32>
    %48 = arith.mulf %5, %14 : vector<8x128xf32>
    %49 = arith.subf %47, %48 : vector<8x128xf32>
    %cst_30 = arith.constant dense<0.000000e+00> : vector<8xf32>
    %50 = vector.multi_reduction <add>, %49, %cst_30 [1] : vector<8x128xf32> to vector<8xf32>
    %51 = vector.shape_cast %50 : vector<8xf32> to vector<8x1xf32>
    %cst_31 = arith.constant dense<0.000000e+00> : vector<1xf32>
    %52 = vector.multi_reduction <add>, %51, %cst_31 [0] : vector<8x1xf32> to vector<1xf32>
    %53 = vector.shape_cast %52 : vector<1xf32> to vector<1x1xf32>
    %54 = arith.mulf %5, %13 : vector<8x128xf32>
    %55 = arith.mulf %1, %15 : vector<8x128xf32>
    %56 = arith.subf %54, %55 : vector<8x128xf32>
    %cst_32 = arith.constant dense<0.000000e+00> : vector<8xf32>
    %57 = vector.multi_reduction <add>, %56, %cst_32 [1] : vector<8x128xf32> to vector<8xf32>
    %58 = vector.shape_cast %57 : vector<8xf32> to vector<8x1xf32>
    %cst_33 = arith.constant dense<0.000000e+00> : vector<1xf32>
    %59 = vector.multi_reduction <add>, %58, %cst_33 [0] : vector<8x1xf32> to vector<1xf32>
    %60 = vector.shape_cast %59 : vector<1xf32> to vector<1x1xf32>
    %61 = arith.mulf %1, %14 : vector<8x128xf32>
    %62 = arith.mulf %3, %13 : vector<8x128xf32>
    %63 = arith.subf %61, %62 : vector<8x128xf32>
    %cst_34 = arith.constant dense<0.000000e+00> : vector<8xf32>
    %64 = vector.multi_reduction <add>, %63, %cst_34 [1] : vector<8x128xf32> to vector<8xf32>
    %65 = vector.shape_cast %64 : vector<8xf32> to vector<8x1xf32>
    %cst_35 = arith.constant dense<0.000000e+00> : vector<1xf32>
    %66 = vector.multi_reduction <add>, %65, %cst_35 [0] : vector<8x1xf32> to vector<1xf32>
    %67 = vector.shape_cast %66 : vector<1xf32> to vector<1x1xf32>
    %68 = arith.mulf %16, %1 : vector<8x128xf32>
    %cst_36 = arith.constant dense<0.000000e+00> : vector<8xf32>
    %69 = vector.multi_reduction <add>, %68, %cst_36 [1] : vector<8x128xf32> to vector<8xf32>
    %70 = vector.shape_cast %69 : vector<8xf32> to vector<8x1xf32>
    %cst_37 = arith.constant dense<0.000000e+00> : vector<1xf32>
    %71 = vector.multi_reduction <add>, %70, %cst_37 [0] : vector<8x1xf32> to vector<1xf32>
    %72 = vector.shape_cast %71 : vector<1xf32> to vector<1x1xf32>
    %73 = arith.mulf %17, %3 : vector<8x128xf32>
    %cst_38 = arith.constant dense<0.000000e+00> : vector<8xf32>
    %74 = vector.multi_reduction <add>, %73, %cst_38 [1] : vector<8x128xf32> to vector<8xf32>
    %75 = vector.shape_cast %74 : vector<8xf32> to vector<8x1xf32>
    %cst_39 = arith.constant dense<0.000000e+00> : vector<1xf32>
    %76 = vector.multi_reduction <add>, %75, %cst_39 [0] : vector<8x1xf32> to vector<1xf32>
    %77 = vector.shape_cast %76 : vector<1xf32> to vector<1x1xf32>
    %78 = arith.mulf %18, %5 : vector<8x128xf32>
    %cst_40 = arith.constant dense<0.000000e+00> : vector<8xf32>
    %79 = vector.multi_reduction <add>, %78, %cst_40 [1] : vector<8x128xf32> to vector<8xf32>
    %80 = vector.shape_cast %79 : vector<8xf32> to vector<8x1xf32>
    %cst_41 = arith.constant dense<0.000000e+00> : vector<1xf32>
    %81 = vector.multi_reduction <add>, %80, %cst_41 [0] : vector<8x1xf32> to vector<1xf32>
    %82 = vector.shape_cast %81 : vector<1xf32> to vector<1x1xf32>
    %83 = arith.mulf %16, %3 : vector<8x128xf32>
    %cst_42 = arith.constant dense<0.000000e+00> : vector<8xf32>
    %84 = vector.multi_reduction <add>, %83, %cst_42 [1] : vector<8x128xf32> to vector<8xf32>
    %85 = vector.shape_cast %84 : vector<8xf32> to vector<8x1xf32>
    %cst_43 = arith.constant dense<0.000000e+00> : vector<1xf32>
    %86 = vector.multi_reduction <add>, %85, %cst_43 [0] : vector<8x1xf32> to vector<1xf32>
    %87 = vector.shape_cast %86 : vector<1xf32> to vector<1x1xf32>
    %88 = arith.mulf %16, %5 : vector<8x128xf32>
    %cst_44 = arith.constant dense<0.000000e+00> : vector<8xf32>
    %89 = vector.multi_reduction <add>, %88, %cst_44 [1] : vector<8x128xf32> to vector<8xf32>
    %90 = vector.shape_cast %89 : vector<8xf32> to vector<8x1xf32>
    %cst_45 = arith.constant dense<0.000000e+00> : vector<1xf32>
    %91 = vector.multi_reduction <add>, %90, %cst_45 [0] : vector<8x1xf32> to vector<1xf32>
    %92 = vector.shape_cast %91 : vector<1xf32> to vector<1x1xf32>
    %93 = arith.mulf %17, %5 : vector<8x128xf32>
    %cst_46 = arith.constant dense<0.000000e+00> : vector<8xf32>
    %94 = vector.multi_reduction <add>, %93, %cst_46 [1] : vector<8x128xf32> to vector<8xf32>
    %95 = vector.shape_cast %94 : vector<8xf32> to vector<8x1xf32>
    %cst_47 = arith.constant dense<0.000000e+00> : vector<1xf32>
    %96 = vector.multi_reduction <add>, %95, %cst_47 [0] : vector<8x1xf32> to vector<1xf32>
    %97 = vector.shape_cast %96 : vector<1xf32> to vector<1x1xf32>
    %cst_48 = arith.constant 1.000000e+00 : f32
    %98 = vector.broadcast %cst_48 : f32 to vector<1x1xf32>
    %99 = arith.divf %98, %22 : vector<1x1xf32>
    %100 = arith.mulf %38, %99 : vector<1x1xf32>
    %101 = arith.mulf %42, %99 : vector<1x1xf32>
    %102 = arith.mulf %46, %99 : vector<1x1xf32>
    %103 = arith.mulf %101, %34 : vector<1x1xf32>
    %104 = arith.mulf %102, %30 : vector<1x1xf32>
    %105 = arith.subf %103, %104 : vector<1x1xf32>
    %106 = arith.subf %53, %105 : vector<1x1xf32>
    %107 = arith.mulf %102, %26 : vector<1x1xf32>
    %108 = arith.mulf %100, %34 : vector<1x1xf32>
    %109 = arith.subf %107, %108 : vector<1x1xf32>
    %110 = arith.subf %60, %109 : vector<1x1xf32>
    %111 = arith.mulf %100, %30 : vector<1x1xf32>
    %112 = arith.mulf %101, %26 : vector<1x1xf32>
    %113 = arith.subf %111, %112 : vector<1x1xf32>
    %114 = arith.subf %67, %113 : vector<1x1xf32>
    %115 = arith.mulf %22, %100 : vector<1x1xf32>
    %116 = arith.mulf %115, %100 : vector<1x1xf32>
    %117 = arith.subf %72, %116 : vector<1x1xf32>
    %118 = arith.mulf %22, %101 : vector<1x1xf32>
    %119 = arith.mulf %118, %101 : vector<1x1xf32>
    %120 = arith.subf %77, %119 : vector<1x1xf32>
    %121 = arith.mulf %22, %102 : vector<1x1xf32>
    %122 = arith.mulf %121, %102 : vector<1x1xf32>
    %123 = arith.subf %82, %122 : vector<1x1xf32>
    %124 = arith.mulf %22, %100 : vector<1x1xf32>
    %125 = arith.mulf %124, %101 : vector<1x1xf32>
    %126 = arith.subf %87, %125 : vector<1x1xf32>
    %127 = arith.mulf %22, %100 : vector<1x1xf32>
    %128 = arith.mulf %127, %102 : vector<1x1xf32>
    %129 = arith.subf %92, %128 : vector<1x1xf32>
    %130 = arith.mulf %22, %101 : vector<1x1xf32>
    %131 = arith.mulf %130, %102 : vector<1x1xf32>
    %132 = arith.subf %97, %131 : vector<1x1xf32>
    %133 = arith.addf %120, %123 : vector<1x1xf32>
    %134 = arith.addf %117, %123 : vector<1x1xf32>
    %135 = arith.addf %117, %120 : vector<1x1xf32>
    %cst_49 = arith.constant 0.000000e+00 : f32
    %136 = vector.broadcast %cst_49 : f32 to vector<1x1xf32>
    %137 = arith.subf %136, %126 : vector<1x1xf32>
    %cst_50 = arith.constant 0.000000e+00 : f32
    %138 = vector.broadcast %cst_50 : f32 to vector<1x1xf32>
    %139 = arith.subf %138, %129 : vector<1x1xf32>
    %cst_51 = arith.constant 0.000000e+00 : f32
    %140 = vector.broadcast %cst_51 : f32 to vector<1x1xf32>
    %141 = arith.subf %140, %132 : vector<1x1xf32>
    %142 = arith.mulf %134, %135 : vector<1x1xf32>
    %143 = arith.mulf %141, %141 : vector<1x1xf32>
    %144 = arith.subf %142, %143 : vector<1x1xf32>
    %145 = arith.mulf %133, %144 : vector<1x1xf32>
    %146 = arith.mulf %137, %135 : vector<1x1xf32>
    %147 = arith.mulf %141, %139 : vector<1x1xf32>
    %148 = arith.subf %146, %147 : vector<1x1xf32>
    %149 = arith.mulf %137, %148 : vector<1x1xf32>
    %150 = arith.subf %145, %149 : vector<1x1xf32>
    %151 = arith.mulf %137, %141 : vector<1x1xf32>
    %152 = arith.mulf %134, %139 : vector<1x1xf32>
    %153 = arith.subf %151, %152 : vector<1x1xf32>
    %154 = arith.mulf %139, %153 : vector<1x1xf32>
    %155 = arith.addf %150, %154 : vector<1x1xf32>
    %cst_52 = arith.constant 1.000000e+00 : f32
    %156 = vector.broadcast %cst_52 : f32 to vector<1x1xf32>
    %157 = arith.divf %156, %155 : vector<1x1xf32>
    %158 = arith.mulf %134, %135 : vector<1x1xf32>
    %159 = arith.mulf %141, %141 : vector<1x1xf32>
    %160 = arith.subf %158, %159 : vector<1x1xf32>
    %161 = arith.mulf %139, %141 : vector<1x1xf32>
    %162 = arith.mulf %137, %135 : vector<1x1xf32>
    %163 = arith.subf %161, %162 : vector<1x1xf32>
    %164 = arith.mulf %137, %141 : vector<1x1xf32>
    %165 = arith.mulf %139, %134 : vector<1x1xf32>
    %166 = arith.subf %164, %165 : vector<1x1xf32>
    %167 = arith.mulf %133, %135 : vector<1x1xf32>
    %168 = arith.mulf %139, %139 : vector<1x1xf32>
    %169 = arith.subf %167, %168 : vector<1x1xf32>
    %170 = arith.mulf %139, %137 : vector<1x1xf32>
    %171 = arith.mulf %133, %141 : vector<1x1xf32>
    %172 = arith.subf %170, %171 : vector<1x1xf32>
    %173 = arith.mulf %133, %134 : vector<1x1xf32>
    %174 = arith.mulf %137, %137 : vector<1x1xf32>
    %175 = arith.subf %173, %174 : vector<1x1xf32>
    %176 = arith.mulf %160, %106 : vector<1x1xf32>
    %177 = arith.mulf %163, %110 : vector<1x1xf32>
    %178 = arith.addf %176, %177 : vector<1x1xf32>
    %179 = arith.mulf %166, %114 : vector<1x1xf32>
    %180 = arith.addf %178, %179 : vector<1x1xf32>
    %181 = arith.mulf %180, %157 : vector<1x1xf32>
    %182 = arith.mulf %163, %106 : vector<1x1xf32>
    %183 = arith.mulf %169, %110 : vector<1x1xf32>
    %184 = arith.addf %182, %183 : vector<1x1xf32>
    %185 = arith.mulf %172, %114 : vector<1x1xf32>
    %186 = arith.addf %184, %185 : vector<1x1xf32>
    %187 = arith.mulf %186, %157 : vector<1x1xf32>
    %188 = arith.mulf %166, %106 : vector<1x1xf32>
    %189 = arith.mulf %172, %110 : vector<1x1xf32>
    %190 = arith.addf %188, %189 : vector<1x1xf32>
    %191 = arith.mulf %175, %114 : vector<1x1xf32>
    %192 = arith.addf %190, %191 : vector<1x1xf32>
    %193 = arith.mulf %192, %157 : vector<1x1xf32>
    %194 = arith.mulf %26, %99 : vector<1x1xf32>
    %195 = arith.mulf %30, %99 : vector<1x1xf32>
    %196 = arith.mulf %34, %99 : vector<1x1xf32>
    %197 = arith.mulf %187, %102 : vector<1x1xf32>
    %198 = arith.mulf %193, %101 : vector<1x1xf32>
    %199 = arith.subf %197, %198 : vector<1x1xf32>
    %200 = arith.subf %194, %199 : vector<1x1xf32>
    %201 = arith.mulf %193, %100 : vector<1x1xf32>
    %202 = arith.mulf %181, %102 : vector<1x1xf32>
    %203 = arith.subf %201, %202 : vector<1x1xf32>
    %204 = arith.subf %195, %203 : vector<1x1xf32>
    %205 = arith.mulf %181, %101 : vector<1x1xf32>
    %206 = arith.mulf %187, %100 : vector<1x1xf32>
    %207 = arith.subf %205, %206 : vector<1x1xf32>
    %208 = arith.subf %196, %207 : vector<1x1xf32>
    %209 = vector.broadcast %200 : vector<1x1xf32> to vector<8x128xf32>
    %210 = arith.subf %7, %209 : vector<8x128xf32>
    %211 = vector.broadcast %187 : vector<1x1xf32> to vector<8x128xf32>
    %212 = arith.mulf %211, %5 : vector<8x128xf32>
    %213 = vector.broadcast %193 : vector<1x1xf32> to vector<8x128xf32>
    %214 = arith.mulf %213, %3 : vector<8x128xf32>
    %215 = arith.subf %212, %214 : vector<8x128xf32>
    %216 = arith.subf %210, %215 : vector<8x128xf32>
    %c0_53 = arith.constant 0 : index
    %c0_54 = arith.constant 0 : index
    %c0_55 = arith.constant 0 : index
    %217 = vector.load %arg3[%c0_53, %c0_54, %c0_55] : memref<3x8x128xf32, #tpu.memory_space<vmem>>, vector<1x8x128xf32>
    %218 = vector.shape_cast %217 : vector<1x8x128xf32> to vector<8x128xf32>
    %219 = vector.shape_cast %216 : vector<8x128xf32> to vector<1x8x128xf32>
    tpu.vector_store %arg3[%c0_53, %c0_54, %c0_55], %219 {strides = array<i32>} : memref<3x8x128xf32, #tpu.memory_space<vmem>>, vector<1x8x128xf32>,
    %220 = vector.broadcast %204 : vector<1x1xf32> to vector<8x128xf32>
    %221 = arith.subf %9, %220 : vector<8x128xf32>
    %222 = vector.broadcast %193 : vector<1x1xf32> to vector<8x128xf32>
    %223 = arith.mulf %222, %1 : vector<8x128xf32>
    %224 = vector.broadcast %181 : vector<1x1xf32> to vector<8x128xf32>
    %225 = arith.mulf %224, %5 : vector<8x128xf32>
    %226 = arith.subf %223, %225 : vector<8x128xf32>
    %227 = arith.subf %221, %226 : vector<8x128xf32>
    %c1_56 = arith.constant 1 : index
    %c0_57 = arith.constant 0 : index
    %c0_58 = arith.constant 0 : index
    %228 = vector.load %arg3[%c1_56, %c0_57, %c0_58] : memref<3x8x128xf32, #tpu.memory_space<vmem>>, vector<1x8x128xf32>
    %229 = vector.shape_cast %228 : vector<1x8x128xf32> to vector<8x128xf32>
    %230 = vector.shape_cast %227 : vector<8x128xf32> to vector<1x8x128xf32>
    tpu.vector_store %arg3[%c1_56, %c0_57, %c0_58], %230 {strides = array<i32>} : memref<3x8x128xf32, #tpu.memory_space<vmem>>, vector<1x8x128xf32>,
    %231 = vector.broadcast %208 : vector<1x1xf32> to vector<8x128xf32>
    %232 = arith.subf %11, %231 : vector<8x128xf32>
    %233 = vector.broadcast %181 : vector<1x1xf32> to vector<8x128xf32>
    %234 = arith.mulf %233, %3 : vector<8x128xf32>
    %235 = vector.broadcast %187 : vector<1x1xf32> to vector<8x128xf32>
    %236 = arith.mulf %235, %1 : vector<8x128xf32>
    %237 = arith.subf %234, %236 : vector<8x128xf32>
    %238 = arith.subf %232, %237 : vector<8x128xf32>
    %c2_59 = arith.constant 2 : index
    %c0_60 = arith.constant 0 : index
    %c0_61 = arith.constant 0 : index
    %239 = vector.load %arg3[%c2_59, %c0_60, %c0_61] : memref<3x8x128xf32, #tpu.memory_space<vmem>>, vector<1x8x128xf32>
    %240 = vector.shape_cast %239 : vector<1x8x128xf32> to vector<8x128xf32>
    %241 = vector.shape_cast %238 : vector<8x128xf32> to vector<1x8x128xf32>
    tpu.vector_store %arg3[%c2_59, %c0_60, %c0_61], %241 {strides = array<i32>} : memref<3x8x128xf32, #tpu.memory_space<vmem>>, vector<1x8x128xf32>,
    return
  }
}

</mosaic_0001>

<bundles_post_ra>
// kernel: zero_momentum_lane_dense.1
= control target key start
LH: loop header
LB: loop body
LE: loop exit
PB: predicated region body
PF: predicated region fallthrough
CT: control target
= control target key end

     0   :  { %s445_s2 = inlined_call_operand.vmem [shape: f32[8,128], index: 2, kind: input, shape index: {}]   ;;  %s446_s0 = inlined_call_operand.vmem [shape: f32[3,8,128], index: 0, kind: input, shape index: {}]   ;;  %s447_s1 = inlined_call_operand.vmem [shape: f32[3,8,128], index: 1, kind: input, shape index: {}, may-alias: {1,3}]   ;;  %s448_s3 = inlined_call_operand.vmem [shape: f32[3,8,128], index: 3, kind: output, shape index: {}, may-alias: {1,3}]  }
   0x1   :  { %v24_v0 = vld [vmem:[%s445_s2] sm:$0xff]  ;;  %v331_v1 = vld [vmem:[%s446_s0 + $0x8] sm:$0xff]  ;;  %v343_v5 = vld [vmem:[%s446_s0 + $0x10] sm:$0xff] }
   0x2   :  { %v336_v2 = vld [vmem:[%s446_s0] sm:$0xff]  ;;  %31 = vadd.xlane.f32.xlu0 %v24_v0  ;;  %v29_v3 = vmul.f32 %v331_v1, %v24_v0  ;;  %v30_v6 = vmul.f32 %v343_v5, %v24_v0  ;;  %v353_v11 = vld [vmem:[%s447_s1 + $0x8] sm:$0xff]  ;;  %v358_v12 = vld [vmem:[%s447_s1 + $0x10] sm:$0xff] }
   0x3   :  { %v28_v4 = vmul.f32 %v24_v0, %v336_v2  ;;  %v364_v14 = vld [vmem:[%s447_s1] sm:$0xff]  ;;  %v26_v16 = vmul.f32 %v353_v11, %v24_v0  ;;  %v27_v17 = vmul.f32 %v358_v12, %v24_v0 }
   0x4   :  { %71 = vadd.xlane.f32.xlu1 %v29_v3  ;;  %v129_v8 = vmul.f32 %v331_v1, %v29_v3  ;;  %v138_v9 = vmul.f32 %v343_v5, %v30_v6  ;;  %v165_v15 = vmul.f32 %v343_v5, %v29_v3  ;;  %v25_v18 = vmul.f32 %v24_v0, %v364_v14 }
   0x5   :  { %v120_v7 = vmul.f32 %v28_v4, %v336_v2  ;;  %v147_v10 = vmul.f32 %v331_v1, %v28_v4  ;;  %v156_v13 = vmul.f32 %v343_v5, %v28_v4  ;;  %v87_v19 = vmul.f32 %v331_v1, %v27_v17 }
   0x6   :  { %63 = vadd.xlane.f32.xlu0 %v28_v4  ;;  %v88_v20 = vmul.f32 %v343_v5, %v26_v16  ;;  %v98_v21 = vmul.f32 %v343_v5, %v25_v18  ;;  %v99_v22 = vmul.f32 %v27_v17, %v336_v2  ;;  %v109_v24 = vmul.f32 %v26_v16, %v336_v2 }
   0x7   :  { %v110_v25 = vmul.f32 %v331_v1, %v25_v18 }
   0x8   :  { %79 = vadd.xlane.f32.xlu1 %v30_v6  ;;  %v89_v23 = vsub.f32 %v87_v19, %v88_v20  ;;  %v100_v26 = vsub.f32 %v98_v21, %v99_v22 }
   0x9   :  { %v111_v27 = vsub.f32 %v109_v24, %v110_v25 }
   0xa   :  { %121 = vadd.xlane.f32.xlu0 %v120_v7 }
   0xc   :  { %130 = vadd.xlane.f32.xlu1 %v129_v8 }
   0xe   :  { %139 = vadd.xlane.f32.xlu0 %v138_v9 }
  0x10   :  { %148 = vadd.xlane.f32.xlu1 %v147_v10 }
  0x12   :  { %157 = vadd.xlane.f32.xlu0 %v156_v13 }
  0x14   :  { %166 = vadd.xlane.f32.xlu1 %v165_v15 }
  0x16   :  { %39 = vadd.xlane.f32.xlu0 %v25_v18 }
  0x18   :  { %47 = vadd.xlane.f32.xlu1 %v26_v16 }
  0x1a   :  { %55 = vadd.xlane.f32.xlu0 %v27_v17 }
  0x1c   :  { %90 = vadd.xlane.f32.xlu1 %v89_v23 }
  0x1e   :  { %101 = vadd.xlane.f32.xlu0 %v100_v26 }
  0x20   :  { %112 = vadd.xlane.f32.xlu1 %v111_v27 }
  0x8b   :  { %v32_v28 = vpop.xlane.xlu0 %31 }
  0x8c   :  { %v33_v29 = vrot.slane %v32_v28, 4 }
  0x8d   :  { %v72_v30 = vpop.xlane.xlu1 %71 }
  0x8e   :  { %v34_v31 = vadd.f32 %v33_v29, %v32_v28  ;;  %v73_v32 = vrot.slane %v72_v30, 4 }
  0x8f   :  { %v64_v33 = vpop.xlane.xlu0 %63 }
  0x90   :  { %v35_v34 = vrot.slane %v34_v31, 2  ;;  %v65_v35 = vrot.slane %v64_v33, 4  ;;  %v74_v39 = vadd.f32 %v73_v32, %v72_v30 }
  0x91   :  { %v80_v36 = vpop.xlane.xlu1 %79 }
  0x92   :  { %v36_v37 = vadd.f32 %v35_v34, %v34_v31  ;;  %v81_v38 = vrot.slane %v80_v36, 4  ;;  %v66_v40 = vadd.f32 %v65_v35, %v64_v33  ;;  %v75_v47 = vrot.slane %v74_v39, 2 }
  0x93   :  { %v122_v41 = vpop.xlane.xlu0 %121 }
  0x94   :  { %v37_v42 = vrot.slane %v36_v37, 1  ;;  %v82_v43 = vadd.f32 %v81_v38, %v80_v36  ;;  %v123_v44 = vrot.slane %v122_v41, 4  ;;  %v67_v48 = vrot.slane %v66_v40, 2 }
  0x95   :  { %v131_v45 = vpop.xlane.xlu1 %130  ;;  %v76_v58 = vadd.f32 %v75_v47, %v74_v39 }
  0x96   :  { %v376_v46 = vadd.f32 %v37_v42, %v36_v37  ;;  %v124_v49 = vadd.f32 %v123_v44, %v122_v41  ;;  %v132_v50 = vrot.slane %v131_v45, 4  ;;  %v83_v52 = vrot.slane %v82_v43, 2 }
  0x97   :  { %v140_v51 = vpop.xlane.xlu0 %139  ;;  %v68_v59 = vadd.f32 %v67_v48, %v66_v40  ;;  %v77_v13 = vrot.slane %v76_v58, 1 }
  0x98   :  { %301 = vrcp.f32 %v376_v46  ;;  %v133_v53 = vadd.f32 %v132_v50, %v131_v45  ;;  %v141_v54 = vrot.slane %v140_v51, 4  ;;  %v125_v56 = vrot.slane %v124_v49, 2 }
  0x99   :  { %v149_v55 = vpop.xlane.xlu1 %148  ;;  %v84_v63 = vadd.f32 %v83_v52, %v82_v43  ;;  %v69_v15 = vrot.slane %v68_v59, 1  ;;  %v78_v27 = vadd.f32 %v77_v13, %v76_v58 }
  0x9a   :  { %v150_v57 = vrot.slane %v149_v55, 4  ;;  %v134_v60 = vrot.slane %v133_v53, 2  ;;  %v142_v61 = vadd.f32 %v141_v54, %v140_v51  ;;  %v126_v7 = vadd.f32 %v125_v56, %v124_v49 }
  0x9b   :  { %v158_v62 = vpop.xlane.xlu0 %157  ;;  %v85_v18 = vrot.slane %v84_v63, 1  ;;  %v70_v32 = vadd.f32 %v69_v15, %v68_v59 }
  0x9c   :  { %v151_v0 = vadd.f32 %v150_v57, %v149_v55  ;;  %v159_v3 = vrot.slane %v158_v62, 4  ;;  %v143_v4 = vrot.slane %v142_v61, 2  ;;  %v135_v16 = vadd.f32 %v134_v60, %v133_v53 }
  0x9d   :  { %v167_v6 = vpop.xlane.xlu1 %166  ;;  %v127_v24 = vrot.slane %v126_v7, 1  ;;  %v86_v33 = vadd.f32 %v85_v18, %v84_v63 }
  0x9e   :  { %v152_v8 = vrot.slane %v151_v0, 2  ;;  %v160_v9 = vadd.f32 %v159_v3, %v158_v62  ;;  %v168_v10 = vrot.slane %v167_v6, 4  ;;  %v144_v19 = vadd.f32 %v143_v4, %v142_v61 }
  0x9f   :  { %v40_v17 = vpop.xlane.xlu0 %39  ;;  %v136_v28 = vrot.slane %v135_v16, 1  ;;  %v128_v44 = vadd.f32 %v127_v24, %v126_v7 }
  0xa0   :  { %v161_v20 = vrot.slane %v160_v9, 2  ;;  %v169_v21 = vadd.f32 %v168_v10, %v167_v6  ;;  %v153_v22 = vadd.f32 %v152_v8, %v151_v0  ;;  %v41_v29 = vrot.slane %v40_v17, 4 }
  0xa1   :  { %v48_v23 = vpop.xlane.xlu1 %47  ;;  %v145_v34 = vrot.slane %v144_v19, 1  ;;  %v137_v45 = vadd.f32 %v136_v28, %v135_v16 }
  0xa2   :  { %v162_v25 = vadd.f32 %v161_v20, %v160_v9  ;;  %v170_v26 = vrot.slane %v169_v21, 2  ;;  %v49_v30 = vrot.slane %v48_v23, 4  ;;  %v154_v37 = vrot.slane %v153_v22, 1 }
  0xa3   :  { %v56_v31 = vpop.xlane.xlu0 %55  ;;  %v42_v48 = vadd.f32 %v41_v29, %v40_v17  ;;  %v146_v53 = vadd.f32 %v145_v34, %v144_v19 }
  0xa4   :  { %v171_v35 = vadd.f32 %v170_v26, %v169_v21  ;;  %v163_v38 = vrot.slane %v162_v25, 1  ;;  %v50_v39 = vadd.f32 %v49_v30, %v48_v23  ;;  %v57_v40 = vrot.slane %v56_v31, 4 }
  0xa5   :  { %v379_v36 = vpop.eup %301  ;;  %v91_v54 = vpop.xlane.xlu1 %90  ;;  %v155_v55 = vadd.f32 %v154_v37, %v153_v22  ;;  %v43_v13 = vrot.slane %v42_v48, 2 }
  0xa6   :  { %v382_v41 = vmul.f32 %v379_v36, %v78_v27  ;;  %v385_v42 = vmul.f32 %v379_v36, %v70_v32  ;;  %v388_v43 = vmul.f32 %v379_v36, %v86_v33  ;;  %v172_v47 = vrot.slane %v171_v35, 1 }
  0xa7   :  { %v58_v49 = vadd.f32 %v57_v40, %v56_v31  ;;  %v164_v56 = vadd.f32 %v163_v38, %v162_v25  ;;  %v51_v57 = vrot.slane %v50_v39, 2  ;;  %v92_v58 = vrot.slane %v91_v54, 4  ;;  %v102_v40 = vpop.xlane.xlu0 %101 }
  0xa8   :  { %v191_v50 = vmul.f32 %v385_v42, %v376_v46  ;;  %v194_v51 = vmul.f32 %v382_v41, %v376_v46  ;;  %v197_v52 = vmul.f32 %v388_v43, %v376_v46  ;;  %v173_v3 = vadd.f32 %v172_v47, %v171_v35 }
  0xa9   :  { %v59_v46 = vrot.slane %v58_v49, 2  ;;  %v52_v15 = vadd.f32 %v51_v57, %v50_v39  ;;  %v93_v23 = vadd.f32 %v92_v58, %v91_v54  ;;  %v44_v25 = vadd.f32 %v43_v13, %v42_v48  ;;  %v113_v47 = vpop.xlane.xlu1 %112 }
  0xaa   :  { %v192_v59 = vmul.f32 %v191_v50, %v385_v42  ;;  %v195_v60 = vmul.f32 %v194_v51, %v382_v41  ;;  %v198_v61 = vmul.f32 %v197_v52, %v388_v43  ;;  %v200_v62 = vmul.f32 %v191_v50, %v382_v41 }
  0xab   :  { %v202_v63 = vmul.f32 %v191_v50, %v388_v43  ;;  %v204_v0 = vmul.f32 %v194_v51, %v388_v43  ;;  %v60_v22 = vadd.f32 %v59_v46, %v58_v49  ;;  %v53_v26 = vrot.slane %v52_v15, 1 }
  0xac   :  { %v193_v4 = vsub.f32 %v128_v44, %v192_v59  ;;  %v196_v6 = vsub.f32 %v137_v45, %v195_v60  ;;  %v199_v7 = vsub.f32 %v146_v53, %v198_v61  ;;  %v201_v8 = vsub.f32 %v155_v55, %v200_v62 }
  0xad   :  { %v203_v9 = vsub.f32 %v164_v56, %v202_v63  ;;  %v205_v10 = vsub.f32 %v173_v3, %v204_v0  ;;  %v61_v27 = vrot.slane %v60_v22, 1  ;;  %v94_v29 = vrot.slane %v93_v23, 2 }
  0xae   :  { %v208_v16 = vadd.f32 %v196_v6, %v193_v4  ;;  %v207_v17 = vadd.f32 %v199_v7, %v193_v4  ;;  %v209_v18 = vsub.f32 0.0, %v201_v8  ;;  %v206_v37 = vadd.f32 %v199_v7, %v196_v6 }
  0xaf   :  { %v210_v19 = vsub.f32 0.0, %v203_v9  ;;  %v211_v20 = vsub.f32 0.0, %v205_v10  ;;  %v402_v33 = vadd.f32 %v61_v27, %v60_v22  ;;  %v95_v34 = vadd.f32 %v94_v29, %v93_v23 }
  0xb0   :  { %v212_v21 = vmul.f32 %v208_v16, %v207_v17  ;;  %v216_v30 = vmul.f32 %v209_v18, %v208_v16  ;;  %v45_v44 = vrot.slane %v44_v25, 1  ;;  %v404_v45 = vadd.f32 %v53_v26, %v52_v15 }
  0xb1   :  { %v221_v24 = vmul.f32 %v211_v20, %v209_v18  ;;  %v213_v28 = vmul.f32 %v211_v20, %v211_v20  ;;  %v217_v31 = vmul.f32 %v211_v20, %v210_v19  ;;  %v222_v32 = vmul.f32 %v210_v19, %v207_v17 }
  0xb2   :  { %v179_v50 = vmul.f32 %v382_v41, %v402_v33  ;;  %v96_v51 = vrot.slane %v95_v34, 1  ;;  %v103_v52 = vrot.slane %v102_v40, 4  ;;  %v114_v55 = vrot.slane %v113_v47, 4 }
  0xb3   :  { %v214_v35 = vsub.f32 %v212_v21, %v213_v28  ;;  %v218_v38 = vsub.f32 %v216_v30, %v217_v31  ;;  %v223_v39 = vsub.f32 %v221_v24, %v222_v32  ;;  %v46_v56 = vadd.f32 %v45_v44, %v44_v25 }
  0xb4   :  { %v180_v57 = vmul.f32 %v388_v43, %v404_v45  ;;  %v104_v58 = vadd.f32 %v103_v52, %v102_v40  ;;  %v115_v60 = vadd.f32 %v114_v55, %v113_v47  ;;  %v184_v61 = vmul.f32 %v385_v42, %v402_v33 }
  0xb5   :  { %v215_v48 = vmul.f32 %v214_v35, %v206_v37  ;;  %v219_v49 = vmul.f32 %v218_v38, %v209_v18  ;;  %v224_v54 = vmul.f32 %v223_v39, %v210_v19  ;;  %v97_v62 = vadd.f32 %v96_v51, %v95_v34 }
  0xb6   :  { %v181_v63 = vsub.f32 %v179_v50, %v180_v57  ;;  %v105_v0 = vrot.slane %v104_v58, 2  ;;  %v116_v3 = vrot.slane %v115_v60, 2  ;;  %v183_v46 = vmul.f32 %v388_v43, %v46_v56 }
  0xb7   :  { %v220_v53 = vsub.f32 %v215_v48, %v219_v49  ;;  %v187_v4 = vmul.f32 %v385_v42, %v404_v45  ;;  %v229_v6 = vmul.f32 %v208_v16, %v206_v37  ;;  %v230_v8 = vmul.f32 %v210_v19, %v210_v19 }
  0xb8   :  { %v106_v7 = vadd.f32 %v105_v0, %v104_v58  ;;  %v232_v9 = vmul.f32 %v210_v19, %v209_v18  ;;  %v233_v10 = vmul.f32 %v211_v20, %v206_v37  ;;  %v117_v13 = vadd.f32 %v116_v3, %v115_v60 }
  0xb9   :  { %v225_v59 = vadd.f32 %v224_v54, %v220_v53  ;;  %v182_v15 = vsub.f32 %v97_v62, %v181_v63  ;;  %v185_v21 = vsub.f32 %v183_v46, %v184_v61  ;;  %v235_v23 = vmul.f32 %v207_v17, %v206_v37 }
  0xba   :  { %v107_v22 = vrot.slane %v106_v7, 1  ;;  %v188_v24 = vmul.f32 %v382_v41, %v46_v56  ;;  %v236_v25 = vmul.f32 %v209_v18, %v209_v18  ;;  %v118_v26 = vrot.slane %v117_v13, 1 }
  0xbb   :  { %303 = vrcp.f32 %v225_v59  ;;  %v228_v27 = vsub.f32 %v217_v31, %v216_v30  ;;  %v231_v29 = vsub.f32 %v229_v6, %v230_v8  ;;  %v234_v32 = vsub.f32 %v232_v9, %v233_v10 }
  0xbc   :  { %v108_v28 = vadd.f32 %v107_v22, %v106_v7  ;;  %v119_v34 = vadd.f32 %v118_v26, %v117_v13  ;;  %v189_v38 = vsub.f32 %v187_v4, %v188_v24  ;;  %v238_v16 = vmul.f32 %v214_v35, %v182_v15 }
  0xbd   :  { %v244_v40 = vmul.f32 %v228_v27, %v182_v15  ;;  %v250_v44 = vmul.f32 %v223_v39, %v182_v15  ;;  %v237_v47 = vsub.f32 %v235_v23, %v236_v25  ;;  %v256_v59 = vmul.f32 %v379_v36, %v46_v56 }
  0xbe   :  { %v186_v19 = vsub.f32 %v108_v28, %v185_v21  ;;  %v190_v20 = vsub.f32 %v119_v34, %v189_v38  ;;  %v257_v60 = vmul.f32 %v379_v36, %v404_v45  ;;  %v258_v8 = vmul.f32 %v379_v36, %v402_v33 }
  0xc0   :  { %v239_v48 = vmul.f32 %v228_v27, %v186_v19  ;;  %v245_v49 = vmul.f32 %v231_v29, %v186_v19  ;;  %v251_v50 = vmul.f32 %v234_v32, %v186_v19  ;;  %v241_v17 = vmul.f32 %v223_v39, %v190_v20 }
  0xc1   :  { %v247_v37 = vmul.f32 %v234_v32, %v190_v20  ;;  %v253_v51 = vmul.f32 %v237_v47, %v190_v20 }
  0xc2   :  { %v240_v18 = vadd.f32 %v239_v48, %v238_v16  ;;  %v246_v52 = vadd.f32 %v245_v49, %v244_v40  ;;  %v252_v30 = vadd.f32 %v251_v50, %v250_v44 }
  0xc4   :  { %v242_v53 = vadd.f32 %v241_v17, %v240_v18  ;;  %v248_v54 = vadd.f32 %v247_v37, %v246_v52  ;;  %v254_v55 = vadd.f32 %v253_v51, %v252_v30 }
  0xc8   :  { %v304_v31 = vpop.eup %303 }
  0xc9   :  { %v243_v57 = vmul.f32 %v304_v31, %v242_v53  ;;  %v249_v35 = vmul.f32 %v304_v31, %v248_v54  ;;  %v255_v58 = vmul.f32 %v304_v31, %v254_v55 }
  0xcb   :  { %v259_v61 = vmul.f32 %v249_v35, %v388_v43  ;;  %v260_v39 = vmul.f32 %v255_v58, %v382_v41  ;;  %v263_v62 = vmul.f32 %v255_v58, %v385_v42  ;;  %v264_v63 = vmul.f32 %v243_v57, %v388_v43 }
  0xcc   :  { %v267_v0 = vmul.f32 %v243_v57, %v382_v41  ;;  %v268_v3 = vmul.f32 %v249_v35, %v385_v42  ;;  %v272_v46 = vmul.f32 %v343_v5, %v249_v35  ;;  %v273_v4 = vmul.f32 %v331_v1, %v255_v58 }
  0xcd   :  { %v261_v56 = vsub.f32 %v259_v61, %v260_v39  ;;  %v265_v6 = vsub.f32 %v263_v62, %v264_v63  ;;  %v278_v45 = vmul.f32 %v255_v58, %v336_v2  ;;  %v279_v7 = vmul.f32 %v343_v5, %v243_v57 }
  0xce   :  { %v269_v9 = vsub.f32 %v267_v0, %v268_v3  ;;  %v285_v43 = vmul.f32 %v331_v1, %v243_v57  ;;  %v286_v41 = vmul.f32 %v249_v35, %v336_v2  ;;  %v274_v21 = vsub.f32 %v272_v46, %v273_v4 }
  0xcf   :  { %v262_v10 = vsub.f32 %v256_v59, %v261_v56  ;;  %v266_v42 = vsub.f32 %v257_v60, %v265_v6  ;;  %v280_v23 = vsub.f32 %v278_v45, %v279_v7 }
  0xd0   :  { %v270_v13 = vsub.f32 %v258_v8, %v269_v9  ;;  %v287_v5 = vsub.f32 %v285_v43, %v286_v41 }
  0xd1   :  { %v271_v15 = vsub.f32 %v364_v14, %v262_v10  ;;  %v277_v22 = vsub.f32 %v353_v11, %v266_v42 }
  0xd2   :  { %v284_v24 = vsub.f32 %v358_v12, %v270_v13 }
  0xd3   :  { %v275_v25 = vsub.f32 %v271_v15, %v274_v21  ;;  %v281_v26 = vsub.f32 %v277_v22, %v280_v23 }
  0xd4   :  { %v288_v36 = vsub.f32 %v284_v24, %v287_v5 }
  0xd5   :  { %276 = vst [vmem:[%s448_s3] sm:$0xff] %v275_v25  ;;  %299 = vst [vmem:[%s448_s3 + $0x8] sm:$0xff] %v281_v26 }
  0xd6   :  { %300 = vst [vmem:[%s448_s3 + $0x10] sm:$0xff] %v288_v36 }

</bundles_post_ra>
